<compile_context>
chip_gen: v7x
topology: tpu7x:2x2x1
jax: 0.10.0
libtpu: 0.0.40
codegen_flags: <defaults>
</compile_context>

<pallas_src>
import functools

import jax
import jax.numpy as jnp
from jax.experimental import pallas as pl
from jax.experimental.pallas import tpu as pltpu


def _round_up(n, m):
    return ((n + m - 1) // m) * m


def _cdiv(a, b):
    return -(-a // b)


# ---------------------------------------------------------------------------
# Kernel
# ---------------------------------------------------------------------------
def dueling_q_kernel(x_ref, w1_ref, w2_ref, wva1_ref, whead_ref, bias_ref, q_ref,
                     *, action_dim):
    cdt = w1_ref.dtype                        # MXU operand dtype (bf16 or f32)

    # Lane-aligned bias rows: every slice starts at lane 0 -> free static views.
    b1 = bias_ref[0:1, 0:64]                  # fc1 bias                  (1, 64)
    b2 = bias_ref[1:2, 0:128]                 # fc2 bias                  (1, 128)
    bva1 = bias_ref[2:3, 0:128]               # V_stream || A_stream bias (1, 128)
    bhead = bias_ref[3:4, :]                  # [ bA | bV | 0-pad ]       (1, HC)

    x = x_ref[...]                                                    # (TB, S)

    # fc1 + ReLU                                                      (TB, 64)
    h1 = jnp.dot(x, w1_ref[...], preferred_element_type=jnp.float32) + b1
    h1 = jnp.maximum(h1, 0.0).astype(cdt)

    # fc2 + ReLU                                                      (TB, 128)
    h2 = jnp.dot(h1, w2_ref[...], preferred_element_type=jnp.float32) + b2
    h2 = jnp.maximum(h2, 0.0).astype(cdt)

    # Fused V/A stream hidden: one lane-dense (128,128) matmul.
    #   columns 0..63  -> V_stream hidden, columns 64..127 -> A_stream hidden
    hva = jnp.dot(h2, wva1_ref[...], preferred_element_type=jnp.float32) + bva1
    hva = jnp.maximum(hva, 0.0).astype(cdt)                           # (TB, 128)

    # Fused heads via block-diagonal, lane-dense weight:
    #   lanes 0..action_dim-1 = A (rows 64..127 carry wa)
    #   lane  action_dim      = V (rows 0..63  carry wv), remaining lanes zero.
    va = jnp.dot(hva, whead_ref[...], preferred_element_type=jnp.float32) + bhead

    A = va[:, 0:action_dim]                                           # (TB, A)
    V = va[:, action_dim:action_dim + 1]                              # (TB, 1)
    A_mean = jnp.mean(A, axis=-1, keepdims=True)

    # Dueling combine, stored lane-dense (only lanes 0..action_dim-1 meaningful;
    # the wrapper slices them out).
    q_ref[...] = (va - A_mean + V).astype(q_ref.dtype)


# ---------------------------------------------------------------------------
# Param prep (fusion / packing happens here, once, outside the kernel)
# ---------------------------------------------------------------------------
def pack_params(p, *, compute_dtype=jnp.bfloat16):
    """Fuse V/A streams and heads; pack biases into a lane-aligned slab."""
    action_dim = p["wa"].shape[1]
    head_cols = _round_up(action_dim + 1, 128)   # lane-dense head / output width

    # (128, 128): columns 0..63 = V_stream weight, columns 64..127 = A_stream weight
    wva1 = jnp.concatenate([p["wv1"], p["wa1"]], axis=1)

    # Block-diagonal head weight, A-first / V-last-used-lane, zero elsewhere.
    whead = jnp.zeros((128, head_cols), jnp.float32)
    whead = whead.at[64:128, 0:action_dim].set(p["wa"])               # A block
    whead = whead.at[0:64, action_dim:action_dim + 1].set(p["wv"])    # V column

    # Lane-aligned bias slab: one layer per sublane row, each starting at lane 0.
    bias = jnp.zeros((4, head_cols), jnp.float32)
    bias = bias.at[0, 0:64].set(p["b1"][0])
    bias = bias.at[1, 0:128].set(p["b2"][0])
    bias = bias.at[2, 0:64].set(p["bv1"][0])
    bias = bias.at[2, 64:128].set(p["ba1"][0])
    bias = bias.at[3, 0:action_dim].set(p["ba"][0])
    bias = bias.at[3, action_dim].set(p["bv"][0, 0])

    return {
        "w1": p["w1"].astype(compute_dtype),
        "w2": p["w2"].astype(compute_dtype),
        "wva1": wva1.astype(compute_dtype),
        "whead": whead.astype(compute_dtype),
        "bias": bias,                     # f32, added to f32 accumulators
        "action_dim": action_dim,         # python int (static)
    }


# ---------------------------------------------------------------------------
# Wrapper
# ---------------------------------------------------------------------------
def dueling_qnet_forward(x, packed, *, max_tile_b=4096, core_parallel=False):
    """x: (B, state_dim) float32.  packed: output of pack_params()."""
    B, S = x.shape
    action_dim = packed["action_dim"]
    head_cols = packed["whead"].shape[1]
    cdt = packed["w1"].dtype

    # Minimal number of grid steps with the batch split evenly across them
    # (single step for typical DQN batches -> no per-step fixed overhead; avoids
    # a mostly-padded tail tile for odd batch sizes).
    n_steps = max(1, _cdiv(B, max_tile_b))
    if core_parallel and n_steps % 2:
        n_steps += 1                                   # even grid: >=1 tile per TC
    tb = _round_up(_cdiv(B, n_steps), 8)
    B_pad = tb * n_steps

    xp = x
    if B_pad != B:
        xp = jnp.pad(xp, ((0, B_pad - B), (0, 0)))
    xp = xp.astype(cdt)                                # halves x DMA bytes for bf16

    const = lambda i: (0, 0)        # weights/biases stay VMEM-resident across tiles
    # TODO(synk): on v7x, call with core_parallel=True to shard the batch grid
    # across the two TensorCores; plain "parallel" keeps single-TC chips safe.
    batch_sem = pltpu.CORE_PARALLEL if core_parallel else "parallel"

    kernel = functools.partial(dueling_q_kernel, action_dim=action_dim)

    q = pl.pallas_call(
        kernel,
        out_shape=jax.ShapeDtypeStruct((B_pad, head_cols), jnp.float32),
        grid=(n_steps,),
        in_specs=[
            pl.BlockSpec((tb, S), lambda i: (i, 0)),          # x: tiled over batch
            pl.BlockSpec(packed["w1"].shape, const),
            pl.BlockSpec(packed["w2"].shape, const),
            pl.BlockSpec(packed["wva1"].shape, const),
            pl.BlockSpec(packed["whead"].shape, const),
            pl.BlockSpec(packed["bias"].shape, const),
        ],
        out_specs=pl.BlockSpec((tb, head_cols), lambda i: (i, 0)),   # lane-dense Q
        compiler_params=pltpu.CompilerParams(dimension_semantics=(batch_sem,)),
    )(xp, packed["w1"], packed["w2"], packed["wva1"], packed["whead"], packed["bias"])

    return q[:B, :action_dim]


# ---------------------------------------------------------------------------
# Synthetic params + plain-JAX reference
# ---------------------------------------------------------------------------
def init_params(key, state_dim, action_dim):
    """Shapes match DuelingQNet.__init__ (weights as (in,out), biases (1,out))."""
    keys = jax.random.split(key, 12)

    def w(k, fan_in, fan_out):
        lim = 1.0 / jnp.sqrt(fan_in)
        return jax.random.uniform(k, (fan_in, fan_out), jnp.float32, -lim, lim)

    def b(k, fan_in, fan_out):
        lim = 1.0 / jnp.sqrt(fan_in)
        return jax.random.uniform(k, (1, fan_out), jnp.float32, -lim, lim)

    return {
        "w1":  w(keys[0], state_dim, 64),   "b1":  b(keys[1], state_dim, 64),
        "w2":  w(keys[2], 64, 128),         "b2":  b(keys[3], 64, 128),
        "wv1": w(keys[4], 128, 64),         "bv1": b(keys[5], 128, 64),
        "wv":  w(keys[6], 64, 1),           "bv":  b(keys[7], 64, 1),
        "wa1": w(keys[8], 128, 64),         "ba1": b(keys[9], 128, 64),
        "wa":  w(keys[10], 64, action_dim), "ba":  b(keys[11], 64, action_dim),
    }


def reference_forward(x, p, compute_dtype=jnp.bfloat16):
    """Plain-JAX mirror of the PyTorch forward (same bf16-operand / f32-acc casts)."""
    def mm(a, w):
        return jnp.dot(a.astype(compute_dtype), w.astype(compute_dtype),
                       preferred_element_type=jnp.float32)
    h = jnp.maximum(mm(x, p["w1"]) + p["b1"], 0.0)
    h = jnp.maximum(mm(h, p["w2"]) + p["b2"], 0.0)
    V = mm(jnp.maximum(mm(h, p["wv1"]) + p["bv1"], 0.0), p["wv"]) + p["bv"]
    A = mm(jnp.maximum(mm(h, p["wa1"]) + p["ba1"], 0.0), p["wa"]) + p["ba"]
    return V + (A - A.mean(axis=1, keepdims=True))


if __name__ == "__main__":
    state_dim, action_dim, batch = 16, 4, 8

    key = jax.random.PRNGKey(0)
    kx, kp = jax.random.split(key)
    x = jax.random.normal(kx, (batch, state_dim), dtype=jnp.float32)
    params = init_params(kp, state_dim, action_dim)
    packed = pack_params(params, compute_dtype=jnp.bfloat16)

    q = dueling_qnet_forward(x, packed)
    q = jax.block_until_ready(q)

    q_ref = reference_forward(x, params, compute_dtype=jnp.bfloat16)
    assert q.shape == (batch, action_dim)
    assert jnp.allclose(q, q_ref, atol=2e-3, rtol=2e-3), "mismatch vs reference"

    print("KERNEL_OK")
</pallas_src>

<mosaic_0001>
module attributes {stable_mosaic.version = 11 : i64} {
  func.func @dueling_q_kernel(%arg0: i32, %arg1: memref<8x16xbf16, #tpu.memory_space<vmem>>, %arg2: memref<16x64xbf16, #tpu.memory_space<vmem>>, %arg3: memref<64x128xbf16, #tpu.memory_space<vmem>>, %arg4: memref<128x128xbf16, #tpu.memory_space<vmem>>, %arg5: memref<128x128xbf16, #tpu.memory_space<vmem>>, %arg6: memref<4x128xf32, #tpu.memory_space<vmem>>, %arg7: memref<8x128xf32, #tpu.memory_space<vmem>>) attributes {dimension_semantics = [#tpu.dimension_semantics<parallel>], iteration_bounds = array<i64: 1>, scalar_prefetch = 0 : i64, scratch_operands = 0 : i64, tpu.core_type = #tpu.core_type<tc>, window_params = [{transform_indices = @transform_0, window_bounds = array<i64: 8, 16>}, {pipeline_mode = #tpu.pipeline_mode<synchronous>, transform_indices = @transform_1, window_bounds = array<i64: 16, 64>}, {pipeline_mode = #tpu.pipeline_mode<synchronous>, transform_indices = @transform_2, window_bounds = array<i64: 64, 128>}, {pipeline_mode = #tpu.pipeline_mode<synchronous>, transform_indices = @transform_3, window_bounds = array<i64: 128, 128>}, {pipeline_mode = #tpu.pipeline_mode<synchronous>, transform_indices = @transform_4, window_bounds = array<i64: 128, 128>}, {pipeline_mode = #tpu.pipeline_mode<synchronous>, transform_indices = @transform_5, window_bounds = array<i64: 4, 128>}, {transform_indices = @transform_6, window_bounds = array<i64: 8, 128>}]} {
    %c0 = arith.constant 0 : index
    %c0_0 = arith.constant 0 : index
    %0 = vector.load %arg6[%c0, %c0_0] : memref<4x128xf32, #tpu.memory_space<vmem>>, vector<1x64xf32>
    %c1 = arith.constant 1 : index
    %c0_1 = arith.constant 0 : index
    %1 = vector.load %arg6[%c1, %c0_1] : memref<4x128xf32, #tpu.memory_space<vmem>>, vector<1x128xf32>
    %c2 = arith.constant 2 : index
    %c0_2 = arith.constant 0 : index
    %2 = vector.load %arg6[%c2, %c0_2] : memref<4x128xf32, #tpu.memory_space<vmem>>, vector<1x128xf32>
    %c3 = arith.constant 3 : index
    %c0_3 = arith.constant 0 : index
    %3 = vector.load %arg6[%c3, %c0_3] : memref<4x128xf32, #tpu.memory_space<vmem>>, vector<1x128xf32>
    %c0_4 = arith.constant 0 : index
    %c0_5 = arith.constant 0 : index
    %4 = vector.load %arg1[%c0_4, %c0_5] : memref<8x16xbf16, #tpu.memory_space<vmem>>, vector<8x16xbf16>
    %c0_6 = arith.constant 0 : index
    %c0_7 = arith.constant 0 : index
    %5 = vector.load %arg2[%c0_6, %c0_7] : memref<16x64xbf16, #tpu.memory_space<vmem>>, vector<16x64xbf16>
    %cst = arith.constant dense<0.000000e+00> : vector<8x64xf32>
    %6 = tpu.matmul %4, %5, %cst {dimension_numbers = #tpu.dot_dimension_numbers<[1], [0], [0], [1], [0, 0, 1, 1], [], []>} : vector<8x16xbf16>, vector<16x64xbf16>, vector<8x64xf32> -> vector<8x64xf32>
    %7 = vector.broadcast %0 : vector<1x64xf32> to vector<8x64xf32>
    %8 = arith.addf %6, %7 : vector<8x64xf32>
    %cst_8 = arith.constant 0.000000e+00 : f32
    %9 = vector.broadcast %cst_8 : f32 to vector<8x64xf32>
    %10 = arith.maximumf %8, %9 : vector<8x64xf32>
    %11 = arith.truncf %10 : vector<8x64xf32> to vector<8x64xbf16>
    %c0_9 = arith.constant 0 : index
    %c0_10 = arith.constant 0 : index
    %12 = vector.load %arg3[%c0_9, %c0_10] : memref<64x128xbf16, #tpu.memory_space<vmem>>, vector<64x128xbf16>
    %cst_11 = arith.constant dense<0.000000e+00> : vector<8x128xf32>
    %13 = tpu.matmul %11, %12, %cst_11 {dimension_numbers = #tpu.dot_dimension_numbers<[1], [0], [0], [1], [0, 0, 1, 1], [], []>} : vector<8x64xbf16>, vector<64x128xbf16>, vector<8x128xf32> -> vector<8x128xf32>
    %14 = vector.broadcast %1 : vector<1x128xf32> to vector<8x128xf32>
    %15 = arith.addf %13, %14 : vector<8x128xf32>
    %cst_12 = arith.constant 0.000000e+00 : f32
    %16 = vector.broadcast %cst_12 : f32 to vector<8x128xf32>
    %17 = arith.maximumf %15, %16 : vector<8x128xf32>
    %18 = arith.truncf %17 : vector<8x128xf32> to vector<8x128xbf16>
    %c0_13 = arith.constant 0 : index
    %c0_14 = arith.constant 0 : index
    %19 = vector.load %arg4[%c0_13, %c0_14] : memref<128x128xbf16, #tpu.memory_space<vmem>>, vector<128x128xbf16>
    %cst_15 = arith.constant dense<0.000000e+00> : vector<8x128xf32>
    %20 = tpu.matmul %18, %19, %cst_15 {dimension_numbers = #tpu.dot_dimension_numbers<[1], [0], [0], [1], [0, 0, 1, 1], [], []>} : vector<8x128xbf16>, vector<128x128xbf16>, vector<8x128xf32> -> vector<8x128xf32>
    %21 = vector.broadcast %2 : vector<1x128xf32> to vector<8x128xf32>
    %22 = arith.addf %20, %21 : vector<8x128xf32>
    %cst_16 = arith.constant 0.000000e+00 : f32
    %23 = vector.broadcast %cst_16 : f32 to vector<8x128xf32>
    %24 = arith.maximumf %22, %23 : vector<8x128xf32>
    %25 = arith.truncf %24 : vector<8x128xf32> to vector<8x128xbf16>
    %c0_17 = arith.constant 0 : index
    %c0_18 = arith.constant 0 : index
    %26 = vector.load %arg5[%c0_17, %c0_18] : memref<128x128xbf16, #tpu.memory_space<vmem>>, vector<128x128xbf16>
    %cst_19 = arith.constant dense<0.000000e+00> : vector<8x128xf32>
    %27 = tpu.matmul %25, %26, %cst_19 {dimension_numbers = #tpu.dot_dimension_numbers<[1], [0], [0], [1], [0, 0, 1, 1], [], []>} : vector<8x128xbf16>, vector<128x128xbf16>, vector<8x128xf32> -> vector<8x128xf32>
    %28 = vector.broadcast %3 : vector<1x128xf32> to vector<8x128xf32>
    %29 = arith.addf %27, %28 : vector<8x128xf32>
    %30 = vector.extract_strided_slice %29 {offsets = [0, 0], sizes = [8, 4], strides = [1, 1]} : vector<8x128xf32> to vector<8x4xf32>
    %31 = vector.extract_strided_slice %29 {offsets = [0, 4], sizes = [8, 1], strides = [1, 1]} : vector<8x128xf32> to vector<8x1xf32>
    %cst_20 = arith.constant dense<0.000000e+00> : vector<8xf32>
    %32 = vector.multi_reduction <add>, %30, %cst_20 [1] : vector<8x4xf32> to vector<8xf32>
    %33 = vector.shape_cast %32 : vector<8xf32> to vector<8x1xf32>
    %cst_21 = arith.constant 4.000000e+00 : f32
    %34 = vector.broadcast %cst_21 : f32 to vector<8x1xf32>
    %35 = arith.divf %33, %34 : vector<8x1xf32>
    %36 = vector.broadcast %35 : vector<8x1xf32> to vector<8x128xf32>
    %37 = arith.subf %29, %36 : vector<8x128xf32>
    %38 = vector.broadcast %31 : vector<8x1xf32> to vector<8x128xf32>
    %39 = arith.addf %37, %38 : vector<8x128xf32>
    %c0_22 = arith.constant 0 : index
    %c0_23 = arith.constant 0 : index
    %40 = vector.load %arg7[%c0_22, %c0_23] : memref<8x128xf32, #tpu.memory_space<vmem>>, vector<8x128xf32>
    tpu.vector_store %arg7[%c0_22, %c0_23], %39 {strides = array<i32>} : memref<8x128xf32, #tpu.memory_space<vmem>>, vector<8x128xf32>,
    return
  }
  func.func @transform_0(%arg0: i32) -> (i32, i32) {
    %c0_i32 = arith.constant 0 : i32
    %c0_i32_0 = arith.constant 0 : i32
    return %arg0, %c0_i32 : i32, i32
  }
  func.func @transform_1(%arg0: i32) -> (i32, i32) {
    %c0_i32 = arith.constant 0 : i32
    %c0_i32_0 = arith.constant 0 : i32
    %c0_i32_1 = arith.constant 0 : i32
    return %c0_i32, %c0_i32_0 : i32, i32
  }
  func.func @transform_2(%arg0: i32) -> (i32, i32) {
    %c0_i32 = arith.constant 0 : i32
    %c0_i32_0 = arith.constant 0 : i32
    %c0_i32_1 = arith.constant 0 : i32
    return %c0_i32, %c0_i32_0 : i32, i32
  }
  func.func @transform_3(%arg0: i32) -> (i32, i32) {
    %c0_i32 = arith.constant 0 : i32
    %c0_i32_0 = arith.constant 0 : i32
    %c0_i32_1 = arith.constant 0 : i32
    return %c0_i32, %c0_i32_0 : i32, i32
  }
  func.func @transform_4(%arg0: i32) -> (i32, i32) {
    %c0_i32 = arith.constant 0 : i32
    %c0_i32_0 = arith.constant 0 : i32
    %c0_i32_1 = arith.constant 0 : i32
    return %c0_i32, %c0_i32_0 : i32, i32
  }
  func.func @transform_5(%arg0: i32) -> (i32, i32) {
    %c0_i32 = arith.constant 0 : i32
    %c0_i32_0 = arith.constant 0 : i32
    %c0_i32_1 = arith.constant 0 : i32
    return %c0_i32, %c0_i32_0 : i32, i32
  }
  func.func @transform_6(%arg0: i32) -> (i32, i32) {
    %c0_i32 = arith.constant 0 : i32
    %c0_i32_0 = arith.constant 0 : i32
    return %arg0, %c0_i32 : i32, i32
  }
}

</mosaic_0001>

<bundles_post_ra>
// kernel: tpu_custom_call.1
= control target key start
LH: loop header
LB: loop body
LE: loop exit
PB: predicated region body
PF: predicated region fallthrough
CT: control target
= control target key end

     0   :  { %11 = vsyncpa [#allocation3], 0  ;;  %s939_s0 = inlined_call_operand.hbm [shape: bf16[8,16], index: 0, kind: input, shape index: {}]   ;;  %s940_s1 = inlined_call_operand.hbm [shape: bf16[16,64], index: 1, kind: input, shape index: {}]   ;;  %s941_s2 = inlined_call_operand.hbm [shape: bf16[64,128], index: 2, kind: input, shape index: {}]   ;;  %s942_s3 = inlined_call_operand.hbm [shape: bf16[128,128], index: 3, kind: input, shape index: {}]   ;;  %s943_s4 = inlined_call_operand.hbm [shape: bf16[128,128], index: 4, kind: input, shape index: {}]   ;;  %s944_s5 = inlined_call_operand.vmem [shape: f32[4,128], index: 5, kind: input, shape index: {}]   ;;  %s945_s6 = inlined_call_operand.hbm [shape: f32[8,128], index: 6, kind: output, shape index: {}]  }
   0x1   :  { %12 = vsyncpa [#allocation6], 0 }
   0x2   :  { %13 = vsyncpa [#allocation9], 0 }
   0x3   :  { %14 = vsyncpa [#allocation4], 0  ;;  %s768_s21 = smov [#allocation5]   ;;  %s628_s25 = scalar_lea.hbm %s940_s1, 128 }
   0x4   :  { %s30_s22 = sshll.u32 %s768_s21, 4  ;;  %p629_p0 = scmp.ne.s32.totalorder %s940_s1, %s628_s25  ;;  %s31_s22 = int_to_ptr.vmem [resolvable:$true] %s30_s22 }
   0x5   :  { %p632_p1 = scmp.lt.u32.totalorder %s628_s25, %s940_s1 }
   0x7   :  { %p634_p2 = pnand %p632_p1, %p629_p0 }
   0x9   :  { %637 = shalt.err (!%p634_p2)
}
   0xa   :  { %s638_s30 = scalar_lea.vmem %s31_s22, 128  ;;  %p643_p4 = scmp.lt.s32.totalorder %s31_s22, %s31_s22 }
   0xb   :  { %p639_p3 = scmp.ne.s32.totalorder %s31_s22, %s638_s30  ;;  %p644_p5 = scmp.lt.s32.totalorder %s638_s30, %s638_s30 }
   0xd   :  { %p645_p6 = por %p644_p5, %p643_p4 }
   0xf   :  { %p646_p7 = pnand %p645_p6, %p639_p3 }
  0x11   :  { %649 = shalt.err (!%p646_p7)
}
  0x12   :  { %s769_s7 = smov 64   ;;  %s770_s8 = smov 4  }
  0x13   :  { %36 = dma.hbm_to_vmem [thread:$0]  %s940_s1, 128, %s31_s22, [#allocation6], %s769_s7, %s769_s7, %s770_s8  }
  0x14   :  { %s771_s11 = smov [#allocation8]   ;;  %s772_s13 = smov [#allocation2]  }
  0x15   :  { %s54_s12 = sshll.u32 %s771_s11, 4  ;;  %s21_s14 = sshll.u32 %s772_s13, 4  ;;  %s55_s12 = int_to_ptr.vmem [resolvable:$true] %s54_s12  ;;  %s22_s14 = int_to_ptr.vmem [resolvable:$true] %s21_s14 }
  0x16   :  { %s650_s17 = scalar_lea.hbm %s942_s3, 1024 }
  0x17   :  { %p651_p8 = scmp.ne.s32.totalorder %s942_s3, %s650_s17  ;;  %p654_p9 = scmp.lt.u32.totalorder %s650_s17, %s942_s3 }
  0x19   :  { %p656_p10 = pnand %p654_p9, %p651_p8 }
  0x1b   :  { %659 = shalt.err (!%p656_p10)
}
  0x1c   :  { %s660_s1 = scalar_lea.vmem %s55_s12, 1024  ;;  %p665_p12 = scmp.lt.s32.totalorder %s55_s12, %s55_s12 }
  0x1d   :  { %p661_p11 = scmp.ne.s32.totalorder %s55_s12, %s660_s1  ;;  %p666_p13 = scmp.lt.s32.totalorder %s660_s1, %s660_s1 }
  0x1f   :  { %p667_p0 = por %p666_p13, %p665_p12 }
  0x21   :  { %p668_p1 = pnand %p667_p0, %p661_p11 }
  0x23   :  { %671 = shalt.err (!%p668_p1)
}
  0x24   :  { %60 = dma.hbm_to_vmem [thread:$0]  %s942_s3, 1024, %s55_s12, [#allocation9], %s769_s7, %s769_s7, %s770_s8  }
  0x25   :  { %s672_s26 = scalar_lea.hbm %s939_s0, 64 }
  0x26   :  { %p673_p2 = scmp.ne.s32.totalorder %s939_s0, %s672_s26  ;;  %p676_p3 = scmp.lt.u32.totalorder %s672_s26, %s939_s0 }
  0x28   :  { %p678_p4 = pnand %p676_p3, %p673_p2 }
  0x2a   :  { %681 = shalt.err (!%p678_p4)
}
  0x2b   :  { %s682_s9 = scalar_lea.vmem %s22_s14, 64  ;;  %p687_p6 = scmp.lt.s32.totalorder %s22_s14, %s22_s14 }
  0x2c   :  { %p683_p5 = scmp.ne.s32.totalorder %s22_s14, %s682_s9  ;;  %p688_p7 = scmp.lt.s32.totalorder %s682_s9, %s682_s9 }
  0x2e   :  { %p689_p8 = por %p688_p7, %p687_p6 }
  0x30   :  { %p690_p9 = pnand %p689_p8, %p683_p5 }
  0x32   :  { %693 = shalt.err (!%p690_p9)
}
  0x33   :  { %24 = dma.hbm_to_vmem [thread:$0]  %s939_s0, 64, %s22_s14, [#allocation3]  }
  0x34   :  { %s773_s11 = smov [#allocation7]   ;;  %s774_s13 = smov [#allocation10]  }
  0x35   :  { %s42_s12 = sshll.u32 %s773_s11, 4  ;;  %s66_s15 = sshll.u32 %s774_s13, 4  ;;  %s43_s12 = int_to_ptr.vmem [resolvable:$true] %s42_s12  ;;  %s67_s15 = int_to_ptr.vmem [resolvable:$true] %s66_s15 }
  0x36   :  { %s694_s18 = scalar_lea.hbm %s941_s2, 512 }
  0x37   :  { %p695_p10 = scmp.ne.s32.totalorder %s941_s2, %s694_s18  ;;  %p698_p11 = scmp.lt.u32.totalorder %s694_s18, %s941_s2 }
  0x39   :  { %p700_p12 = pnand %p698_p11, %p695_p10 }
  0x3b   :  { %703 = shalt.err (!%p700_p12)
}
  0x3c   :  { %s704_s0 = scalar_lea.vmem %s43_s12, 512  ;;  %p709_p0 = scmp.lt.s32.totalorder %s43_s12, %s43_s12 }
  0x3d   :  { %p705_p13 = scmp.ne.s32.totalorder %s43_s12, %s704_s0  ;;  %p710_p1 = scmp.lt.s32.totalorder %s704_s0, %s704_s0 }
  0x3f   :  { %p711_p2 = por %p710_p1, %p709_p0 }
  0x41   :  { %p712_p3 = pnand %p711_p2, %p705_p13 }
  0x43   :  { %715 = shalt.err (!%p712_p3)
}
  0x44   :  { %48 = dma.hbm_to_vmem [thread:$0]  %s941_s2, 512, %s43_s12, [#allocation6], %s769_s7, %s769_s7, %s770_s8  }
  0x45   :  { %s716_s25 = scalar_lea.hbm %s943_s4, 1024 }
  0x46   :  { %p717_p4 = scmp.ne.s32.totalorder %s943_s4, %s716_s25  ;;  %p720_p5 = scmp.lt.u32.totalorder %s716_s25, %s943_s4 }
  0x48   :  { %p722_p6 = pnand %p720_p5, %p717_p4 }
  0x4a   :  { %725 = shalt.err (!%p722_p6)
}
  0x4b   :  { %s726_s30 = scalar_lea.vmem %s67_s15, 1024  ;;  %p731_p8 = scmp.lt.s32.totalorder %s67_s15, %s67_s15 }
  0x4c   :  { %p727_p7 = scmp.ne.s32.totalorder %s67_s15, %s726_s30  ;;  %p732_p9 = scmp.lt.s32.totalorder %s726_s30, %s726_s30 }
  0x4e   :  { %p733_p10 = por %p732_p9, %p731_p8 }
  0x50   :  { %p734_p11 = pnand %p733_p10, %p727_p7 }
  0x52   :  { %737 = shalt.err (!%p734_p11)
}
  0x53   :  { %72 = dma.hbm_to_vmem [thread:$0]  %s943_s4, 1024, %s67_s15, [#allocation9], %s769_s7, %s769_s7, %s770_s8  }
  0x54   :  { %760 = dma.done.wait [#allocation3], 64  }
  0x55   :  { %761 = vsyncadd [#allocation3], 4294967232 }
  0x56   :  { %762 = dma.done.wait [#allocation6], 640  }
  0x57   :  { %763 = vsyncadd [#allocation6], 4294966656 }
  0x58   :  { %764 = dma.done.wait [#allocation9], 2048  }
  0x59   :  { %765 = vsyncadd [#allocation9], 4294965248  ;;  %v775_v0 = vmov 0.0   ;;  %vm776_vm0 = vmmov 0   ;;  %v607_v1 = vld [vmem:[#allocation5] sm:$0xff]   ;;  %vm108_vm1 = vcmask 130048  }
  0x5a   :  { %537 = vmatprep.subr.bf16.mxu0 %v775_v0  ;;  %539 = vmatprep.mubr.msk.bf16.mxu0 %vm776_vm0, %v775_v0  ;;  %v95_v2 = vld [vmem:[#allocation2] sm:$0xf]  ;;  %v608_v3 = vld [vmem:[#allocation7] sm:$0xff]   ;;  %v609_v4 = vld [vmem:[#allocation7 + $0x8] sm:$0xff]   ;;  %vm190_vm2 = vcmask 523264   ;;  %v777_v47 = vmov 4  }
  0x5b   :  { %543 = vmatprep.subr.bf16.mxu1 %v775_v0  ;;  %551 = vmatprep.mubr.msk.bf16.mxu1 %vm776_vm0, %v775_v0  ;;  %v610_v5 = vld [vmem:[#allocation7 + $0x10] sm:$0xff]   ;;  %v611_v6 = vld [vmem:[#allocation7 + $0x18] sm:$0xff]   ;;  %v612_v7 = vld [vmem:[#allocation8] sm:$0xff]   ;;  %vm454_vm3 = vcmask 31744   ;;  %s778_s15 = smov [#allocation11]  }
  0x5c   :  { %538 = vmatpush3.bf16.msra.mxu0 %v607_v1  ;;  %544 = vmatpush3.bf16.msra.mxu1 %v608_v3  ;;  %v613_v8 = vld [vmem:[#allocation8 + $0x8] sm:$0xff]   ;;  %v614_v9 = vld [vmem:[#allocation8 + $0x10] sm:$0xff]   ;;  %v615_v10 = vld [vmem:[#allocation8 + $0x18] sm:$0xff]   ;;  %s474_s16 = sshll.u32 %s778_s15, 4  ;;  %s475_s16 = int_to_ptr.vmem [resolvable:$true] %s474_s16 }
  0x5d   :  { %555 = vmatprep.subr.bf16.mxu0 %v775_v0  ;;  %545 = vmatprep.subr.bf16.mxu1 %v775_v0  ;;  %v616_v11 = vld [vmem:[#allocation8 + $0x20] sm:$0xff]   ;;  %v617_v12 = vld [vmem:[#allocation8 + $0x28] sm:$0xff]   ;;  %v485_v13 = vld [vmem:[%s944_s5] ss:$0 sm:$0xff]  ;;  %s738_s17 = scalar_lea.vmem %s475_s16, 128  ;;  %p743_p13 = scmp.lt.s32.totalorder %s475_s16, %s475_s16 }
  0x5e   :  { %v618_v21 = vld [vmem:[#allocation8 + $0x30] sm:$0xff]   ;;  %v619_v22 = vld [vmem:[#allocation8 + $0x38] sm:$0xff]   ;;  %v620_v23 = vld [vmem:[#allocation10] sm:$0xff]   ;;  %606 = vset.pattern.permute.xlu0 %v777_v47  ;;  %p739_p12 = scmp.ne.s32.totalorder %s475_s16, %s738_s17  ;;  %p744_p0 = scmp.lt.s32.totalorder %s738_s17, %s738_s17 }
  0x5f   :  { %540 = vmatmul.mubr.msk.bf16.vlgmr.msra.gmra.mrb[0].mxu0 %vm108_vm1, %v95_v2  ;;  %v621_v24 = vld [vmem:[#allocation10 + $0x8] sm:$0xff]   ;;  %v622_v25 = vld [vmem:[#allocation10 + $0x10] sm:$0xff]   ;;  %v623_v26 = vld [vmem:[#allocation10 + $0x18] sm:$0xff]  }
  0x60   :  { %571 = vmatprep.mubr.msk.bf16.mxu0 %vm776_vm0, %v775_v0  ;;  %546 = vmatpush3.bf16.msra.mxu1 %v609_v4  ;;  %v624_v27 = vld [vmem:[#allocation10 + $0x20] sm:$0xff]   ;;  %v625_v28 = vld [vmem:[#allocation10 + $0x28] sm:$0xff]   ;;  %v488_v29 = vld [vmem:[%s944_s5 + $0x1] ss:$0 sm:$0xff]  ;;  %p745_p1 = por %p744_p0, %p743_p13 }
  0x61   :  { %547 = vmatprep.subr.bf16.mxu1 %v775_v0  ;;  %556 = vmatpush3.bf16.msra.mxu0 %v612_v7  ;;  %v626_v37 = vld [vmem:[#allocation10 + $0x30] sm:$0xff]   ;;  %v627_v38 = vld [vmem:[#allocation10 + $0x38] sm:$0xff]  }
  0x62   :  { %557 = vmatprep.subr.bf16.mxu0 %v775_v0  ;;  %v494_v39 = vld [vmem:[%s944_s5 + $0x2] ss:$0 sm:$0xff]  ;;  %v503_v48 = vld [vmem:[%s944_s5 + $0x3] ss:$0 sm:$0xff]  ;;  %p746_p2 = pnand %p745_p1, %p739_p12 }
  0x64   :  { %548 = vmatpush3.bf16.msra.mxu1 %v610_v5 }
  0x65   :  { %549 = vmatprep.subr.bf16.mxu1 %v775_v0  ;;  %558 = vmatpush3.bf16.msra.mxu0 %v613_v8 }
  0x66   :  { %559 = vmatprep.subr.bf16.mxu0 %v775_v0 }
  0x68   :  { %550 = vmatpush3.bf16.msra.mxu1 %v611_v6 }
  0x69   :  { %575 = vmatprep.subr.bf16.mxu1 %v775_v0  ;;  %560 = vmatpush3.bf16.msra.mxu0 %v614_v9 }
  0x6a   :  { %561 = vmatprep.subr.bf16.mxu0 %v775_v0 }
  0x6d   :  { %562 = vmatpush3.bf16.msra.mxu0 %v615_v10 }
  0x6e   :  { %563 = vmatprep.subr.bf16.mxu0 %v775_v0 }
  0x71   :  { %564 = vmatpush3.bf16.msra.mxu0 %v616_v11 }
  0x72   :  { %565 = vmatprep.subr.bf16.mxu0 %v775_v0 }
  0x75   :  { %566 = vmatpush3.bf16.msra.mxu0 %v617_v12 }
  0x76   :  { %567 = vmatprep.subr.bf16.mxu0 %v775_v0 }
  0x79   :  { %568 = vmatpush3.bf16.msra.mxu0 %v618_v21 }
  0x7a   :  { %569 = vmatprep.subr.bf16.mxu0 %v775_v0 }
  0x7d   :  { %570 = vmatpush3.bf16.msra.mxu0 %v619_v22 }
 0x132   :  { %v146_v14 = vpop.f32.mrb[0].mxu0 }
 0x133   :  { %v147_v15 = vadd.f32 %v485_v13, %v146_v14  ;;  %v541_v16 = vpop.f32.mrb[1].mxu0 }
 0x134   :  { %v149_v17 = vpop.f32.mrb[2].mxu0 }
 0x135   :  { %v152_v18 = vmax.f32 %v147_v15, 0.0  ;;  %v542_v19 = vpop.f32.mrb[3].mxu0 }
 0x137   :  { %v153_v20 = vpack.c.bf16 %v152_v18, %v152_v18 }
 0x139   :  { %552 = vmatmul.mubr.msk.bf16.vlgmr.msra.gmra.mrb[0].mxu1 %vm190_vm2, %v153_v20 }
 0x13a   :  { %591 = vmatprep.mubr.msk.bf16.mxu1 %vm776_vm0, %v775_v0  ;;  %576 = vmatpush3.bf16.msra.mxu1 %v620_v23 }
 0x13b   :  { %577 = vmatprep.subr.bf16.mxu1 %v775_v0 }
 0x13e   :  { %578 = vmatpush3.bf16.msra.mxu1 %v621_v24 }
 0x13f   :  { %579 = vmatprep.subr.bf16.mxu1 %v775_v0 }
 0x142   :  { %580 = vmatpush3.bf16.msra.mxu1 %v622_v25 }
 0x143   :  { %581 = vmatprep.subr.bf16.mxu1 %v775_v0 }
 0x146   :  { %582 = vmatpush3.bf16.msra.mxu1 %v623_v26 }
 0x147   :  { %583 = vmatprep.subr.bf16.mxu1 %v775_v0 }
 0x14a   :  { %584 = vmatpush3.bf16.msra.mxu1 %v624_v27 }
 0x14b   :  { %585 = vmatprep.subr.bf16.mxu1 %v775_v0 }
 0x14e   :  { %586 = vmatpush3.bf16.msra.mxu1 %v625_v28 }
 0x14f   :  { %587 = vmatprep.subr.bf16.mxu1 %v775_v0 }
 0x152   :  { %588 = vmatpush3.bf16.msra.mxu1 %v626_v37 }
 0x153   :  { %589 = vmatprep.subr.bf16.mxu1 %v775_v0 }
 0x156   :  { %590 = vmatpush3.bf16.msra.mxu1 %v627_v38 }
 0x20c   :  { %v228_v30 = vpop.f32.mrb[0].mxu1 }
 0x20d   :  { %v229_v31 = vadd.f32 %v488_v29, %v228_v30  ;;  %v553_v32 = vpop.f32.mrb[1].mxu1 }
 0x20e   :  { %v231_v33 = vpop.f32.mrb[2].mxu1 }
 0x20f   :  { %v234_v34 = vmax.f32 %v229_v31, 0.0  ;;  %v554_v35 = vpop.f32.mrb[3].mxu1 }
 0x211   :  { %v235_v36 = vpack.c.bf16 %v234_v34, %v234_v34 }
 0x213   :  { %572 = vmatmul.mubr.bf16.vlgmr.msra.gmra.mrb[4].mxu0 %v235_v36 }
 0x2e6   :  { %v338_v40 = vpop.f32.mrb[4].mxu0 }
 0x2e7   :  { %v339_v41 = vadd.f32 %v494_v39, %v338_v40  ;;  %v573_v42 = vpop.f32.mrb[5].mxu0 }
 0x2e8   :  { %v341_v43 = vpop.f32.mrb[6].mxu0 }
 0x2e9   :  { %v344_v44 = vmax.f32 %v339_v41, 0.0  ;;  %v574_v45 = vpop.f32.mrb[7].mxu0 }
 0x2eb   :  { %v345_v46 = vpack.c.bf16 %v344_v44, %v344_v44 }
 0x2ed   :  { %592 = vmatmul.mubr.bf16.vlgmr.msra.gmra.mrb[4].mxu1 %v345_v46 }
 0x3c0   :  { %v448_v49 = vpop.f32.mrb[4].mxu1 }
 0x3c1   :  { %v449_v50 = vadd.f32 %v503_v48, %v448_v49  ;;  %v593_v51 = vpop.f32.mrb[5].mxu1 }
 0x3c2   :  { %v451_v52 = vpop.f32.mrb[6].mxu1 }
 0x3c3   :  { %v594_v53 = vpop.f32.mrb[7].mxu1  ;;  %v455_v54 = vsel %vm454_vm3, %v449_v50, 0.0 }
 0x3c4   :  { %456 = vadd.xlane.f32.xlu0 %v455_v54 }
 0x3da   :  { %463 = vperm.xlu0 %606, %v449_v50  }
 0x451   :  { %v457_v55 = vpop.xlane.xlu0 %456 }
 0x452   :  { %v459_v56 = vmul.f32 0.25, %v457_v55 }
 0x454   :  { %v460_v57 = vsub.f32 %v449_v50, %v459_v56 }
 0x459   :  { %v464_v58 = vpop.permute.xlu0 %463 }
 0x45a   :  { %v466_v59 = vadd.f32 %v464_v58, %v460_v57 }
 0x45c   :  { %467 = vst [vmem:[#allocation11] sm:$0xff] %v466_v59 }
 0x45d   :  { %749 = shalt.err (!%p746_p2)
}
 0x45e   :  { %s750_s19 = scalar_lea.hbm %s945_s6, 128 }
 0x45f   :  { %p751_p3 = scmp.ne.s32.totalorder %s945_s6, %s750_s19  ;;  %p754_p4 = scmp.lt.u32.totalorder %s750_s19, %s945_s6 }
 0x461   :  { %p756_p5 = pnand %p754_p4, %p751_p3 }
 0x463   :  { %759 = shalt.err (!%p756_p5)
}
 0x464   :  { %477 = dma.vmem_to_hbm [thread:$0]  %s475_s16, 128, %s945_s6, [#allocation4]  }
 0x465   :  { %766 = dma.done.wait [#allocation4], 128  }
 0x466   :  { %767 = vsyncadd [#allocation4], 4294967168 }
 0x467   :  { %481 = vsyncpa [#allocation3], 1 }
 0x468   :  { %482 = vsyncpa [#allocation6], 1 }
 0x469   :  { %483 = vsyncpa [#allocation9], 1 }
 0x46a   :  { %484 = vsyncpa [#allocation4], 1 }

</bundles_post_ra>
